<compile_context>
chip_gen: v7x
topology: tpu7x:2x2x1
jax: 0.10.0
libtpu: 0.0.40
codegen_flags: <defaults>
</compile_context>

<pallas_src>
import jax
import jax.numpy as jnp
from jax.experimental import pallas as pl
from jax.experimental.pallas import tpu as pltpu

HIDDEN = 40      # fixed by the module definition
LANE = 128       # TPU lane width
NEG_BIG = -1e30  # bias for padded logit lanes -> exp() underflows to 0


def _round_up(n, m):
    return (n + m - 1) // m * m


def _make_kernel(out_size):
    def kernel(x_ref, w1_ref, b1_ref, w2_ref, b2_ref, out_ref):
        # ---- Linear(in, 40 -> 128 padded) + ReLU, f32 accumulation -------
        h = jnp.dot(x_ref[...], w1_ref[...], preferred_element_type=jnp.float32)
        h = jnp.maximum(h + b1_ref[...], 0.0)                  # (TB, 128)

        # ---- Linear(128 padded, out -> 128 padded) ------------------------
        logits = jnp.dot(h.astype(w2_ref.dtype), w2_ref[...],
                         preferred_element_type=jnp.float32)
        logits = logits + b2_ref[...]                           # padded lanes ~ -1e30

        # ---- Softmax(dim=1), stable; padded lanes contribute exactly 0 ----
        m = jnp.max(logits, axis=1, keepdims=True)              # (TB, 1)
        e = jnp.exp(logits - m)                                 # (TB, 128)
        denom = jnp.sum(e, axis=1, keepdims=True)               # (TB, 1), >= 1
        r = pl.reciprocal(denom, approx=True)                   # EUP slot
        r = r * (2.0 - denom * r)                               # Newton step -> f32 acc.
        probs = e * r

        # Only the real columns go back to HBM (no padded-output traffic).
        out_ref[...] = probs[:, :out_size].astype(out_ref.dtype)

    return kernel


def make_genetic_snake_forward(w1, b1, w2, b2, *, compute_dtype=jnp.float32,
                               block_b=4096):
    """Build a jitted forward for fixed params.

    w1: (in_size, 40); b1: (40,); w2: (40, out_size); b2: (out_size,).
    Weights are stored pre-transposed (in_features, out_features), so the
    kernel computes x @ W + b == PyTorch's x @ weight.T + bias.
    Weight padding happens ONCE here, not in the per-call hot path.
    """
    in_size, hidden = w1.shape
    assert hidden == HIDDEN
    out_size = w2.shape[1]
    hid_p = _round_up(HIDDEN, LANE)    # 128
    out_p = _round_up(out_size, LANE)  # 128

    compute_dtype = jnp.dtype(compute_dtype)
    # Lane-dense padded weights in the streaming dtype (f32 or bf16).
    w1_p = jnp.zeros((in_size, hid_p), compute_dtype).at[:, :HIDDEN].set(
        w1.astype(compute_dtype))
    w2_p = jnp.zeros((hid_p, out_p), compute_dtype).at[:HIDDEN, :out_size].set(
        w2.astype(compute_dtype))
    # Biases stay f32 (tiny; added to the f32 accumulators).
    b1_p = jnp.zeros((1, hid_p), jnp.float32).at[0, :HIDDEN].set(
        b1.astype(jnp.float32))
    # Padded logit lanes must never win the softmax max nor add to the sum.
    b2_p = jnp.full((1, out_p), NEG_BIG, jnp.float32).at[0, :out_size].set(
        b2.astype(jnp.float32))

    kernel = _make_kernel(out_size)
    block_b = max(8, _round_up(block_b, 8))     # enforce sublane granularity
    x_bytes = compute_dtype.itemsize

    def forward(x):
        B = x.shape[0]
        assert x.shape[1] == in_size
        x = x.astype(compute_dtype)

        # Batch tile: multiple of 8, capped by block_b; once the batch is big
        # enough, keep the grid at >= 2 steps so v7x's two TensorCores both
        # get work through the "parallel" batch axis.
        b8 = _round_up(B, 8)
        tb = min(block_b, b8)
        if b8 >= 16:
            tb = min(tb, _round_up(pl.cdiv(b8, 2), 8))
        b_pad = _round_up(B, tb)                 # grid divides evenly
        if b_pad != B:
            x = jnp.pad(x, ((0, b_pad - B), (0, 0)))
        grid = (b_pad // tb,)

        cost = pl.CostEstimate(
            flops=2 * b_pad * (in_size * hid_p + hid_p * out_p),
            transcendentals=b_pad * out_p,
            bytes_accessed=(x_bytes * b_pad * in_size
                            + x_bytes * (w1_p.size + w2_p.size)
                            + 4 * (b1_p.size + b2_p.size)
                            + 4 * b_pad * out_size),
        )

        out = pl.pallas_call(
            kernel,
            out_shape=jax.ShapeDtypeStruct((b_pad, out_size), jnp.float32),
            grid=grid,
            in_specs=[
                pl.BlockSpec((tb, in_size), lambda i: (i, 0)),      # x: streamed
                pl.BlockSpec((in_size, hid_p), lambda i: (0, 0)),   # w1: resident
                pl.BlockSpec((1, hid_p), lambda i: (0, 0)),         # b1: resident
                pl.BlockSpec((hid_p, out_p), lambda i: (0, 0)),     # w2: resident
                pl.BlockSpec((1, out_p), lambda i: (0, 0)),         # b2: resident
            ],
            # Unpadded output block: last dim == full array dim (legal) so no
            # 128-lane f32 write amplification + wrapper slice re-read.
            out_specs=pl.BlockSpec((tb, out_size), lambda i: (i, 0)),
            compiler_params=pltpu.CompilerParams(
                dimension_semantics=("parallel",),       # megacore split on v7x
                vmem_limit_bytes=32 * 1024 * 1024,       # safe on v5e/v6e/v7x
            ),
            cost_estimate=cost,
        )(x, w1_p, b1_p, w2_p, b2_p)

        return out if b_pad == B else out[:B]

    return jax.jit(forward)


def init_params(key, in_size, out_size):
    """Deterministic init mimicking nn.Linear's default U(-1/sqrt(fan_in), ...)."""
    k1, k2, k3, k4 = jax.random.split(key, 4)
    bound1 = 1.0 / jnp.sqrt(in_size)
    bound2 = 1.0 / jnp.sqrt(HIDDEN)
    # Stored pre-transposed: (in_features, out_features).
    w1 = jax.random.uniform(k1, (in_size, HIDDEN), jnp.float32, -bound1, bound1)
    b1 = jax.random.uniform(k2, (HIDDEN,), jnp.float32, -bound1, bound1)
    w2 = jax.random.uniform(k3, (HIDDEN, out_size), jnp.float32, -bound2, bound2)
    b2 = jax.random.uniform(k4, (out_size,), jnp.float32, -bound2, bound2)
    return w1, b1, w2, b2


def _reference(x, w1, b1, w2, b2):
    h = jnp.maximum(x @ w1 + b1, 0.0)
    return jax.nn.softmax(h @ w2 + b2, axis=1)


if __name__ == "__main__":
    key = jax.random.PRNGKey(0)
    kx, kp, kx2 = jax.random.split(key, 3)

    # ---- small-shape check (batch=2, in=32, out=4) ------------------------
    batch, in_size, out_size = 2, 32, 4
    x = jax.random.normal(kx, (batch, in_size), jnp.float32)
    w1, b1, w2, b2 = init_params(kp, in_size, out_size)

    fwd = make_genetic_snake_forward(w1, b1, w2, b2)        # f32 path
    out = jax.block_until_ready(fwd(x))
    ref = _reference(x, w1, b1, w2, b2)
    assert out.shape == (batch, out_size)
    assert jnp.allclose(out, ref, atol=1e-4, rtol=1e-4)
    assert jnp.allclose(jnp.sum(out, axis=1), 1.0, atol=1e-4)

    # ---- multi-tile check: exercises the batch grid / resident weights ----
    big_batch = 2048
    x_big = jax.random.normal(kx2, (big_batch, in_size), jnp.float32)
    fwd_tiled = make_genetic_snake_forward(w1, b1, w2, b2, block_b=512)  # grid of 4
    out_big = jax.block_until_ready(fwd_tiled(x_big))
    ref_big = _reference(x_big, w1, b1, w2, b2)
    assert out_big.shape == (big_batch, out_size)
    assert jnp.allclose(out_big, ref_big, atol=1e-4, rtol=1e-4)

    # ---- bf16 streaming path (halves x HBM traffic), looser tolerance -----
    fwd_bf16 = make_genetic_snake_forward(w1, b1, w2, b2,
                                          compute_dtype=jnp.bfloat16)
    out_bf16 = jax.block_until_ready(fwd_bf16(x_big))
    assert out_bf16.shape == (big_batch, out_size)
    assert jnp.allclose(out_bf16, ref_big, atol=3e-2)

    print("KERNEL_OK")
</pallas_src>

<mosaic_0001>
module attributes {stable_mosaic.version = 11 : i64} {
  func.func @kernel(%arg0: i32, %arg1: memref<8x32xf32, #tpu.memory_space<vmem>>, %arg2: memref<32x128xf32, #tpu.memory_space<vmem>>, %arg3: memref<1x128xf32, #tpu.memory_space<vmem>>, %arg4: memref<128x128xf32, #tpu.memory_space<vmem>>, %arg5: memref<1x128xf32, #tpu.memory_space<vmem>>, %arg6: memref<8x4xf32, #tpu.memory_space<vmem>>) attributes {dimension_semantics = [#tpu.dimension_semantics<parallel>], iteration_bounds = array<i64: 1>, scalar_prefetch = 0 : i64, scratch_operands = 0 : i64, tpu.core_type = #tpu.core_type<tc>, window_params = [{transform_indices = @transform_0, window_bounds = array<i64: 8, 32>}, {pipeline_mode = #tpu.pipeline_mode<synchronous>, transform_indices = @transform_1, window_bounds = array<i64: 32, 128>}, {pipeline_mode = #tpu.pipeline_mode<synchronous>, transform_indices = @transform_2, window_bounds = array<i64: 1, 128>}, {pipeline_mode = #tpu.pipeline_mode<synchronous>, transform_indices = @transform_3, window_bounds = array<i64: 128, 128>}, {pipeline_mode = #tpu.pipeline_mode<synchronous>, transform_indices = @transform_4, window_bounds = array<i64: 1, 128>}, {transform_indices = @transform_5, window_bounds = array<i64: 8, 4>}]} {
    %c0 = arith.constant 0 : index
    %c0_0 = arith.constant 0 : index
    %0 = vector.load %arg1[%c0, %c0_0] : memref<8x32xf32, #tpu.memory_space<vmem>>, vector<8x32xf32>
    %c0_1 = arith.constant 0 : index
    %c0_2 = arith.constant 0 : index
    %1 = vector.load %arg2[%c0_1, %c0_2] : memref<32x128xf32, #tpu.memory_space<vmem>>, vector<32x128xf32>
    %cst = arith.constant dense<0.000000e+00> : vector<8x128xf32>
    %2 = tpu.matmul %0, %1, %cst {dimension_numbers = #tpu.dot_dimension_numbers<[1], [0], [0], [1], [0, 0, 1, 1], [], []>} : vector<8x32xf32>, vector<32x128xf32>, vector<8x128xf32> -> vector<8x128xf32>
    %c0_3 = arith.constant 0 : index
    %c0_4 = arith.constant 0 : index
    %3 = vector.load %arg3[%c0_3, %c0_4] : memref<1x128xf32, #tpu.memory_space<vmem>>, vector<1x128xf32>
    %4 = vector.broadcast %3 : vector<1x128xf32> to vector<8x128xf32>
    %5 = arith.addf %2, %4 : vector<8x128xf32>
    %cst_5 = arith.constant 0.000000e+00 : f32
    %6 = vector.broadcast %cst_5 : f32 to vector<8x128xf32>
    %7 = arith.maximumf %5, %6 : vector<8x128xf32>
    %c0_6 = arith.constant 0 : index
    %c0_7 = arith.constant 0 : index
    %8 = vector.load %arg4[%c0_6, %c0_7] : memref<128x128xf32, #tpu.memory_space<vmem>>, vector<128x128xf32>
    %cst_8 = arith.constant dense<0.000000e+00> : vector<8x128xf32>
    %9 = tpu.matmul %7, %8, %cst_8 {dimension_numbers = #tpu.dot_dimension_numbers<[1], [0], [0], [1], [0, 0, 1, 1], [], []>} : vector<8x128xf32>, vector<128x128xf32>, vector<8x128xf32> -> vector<8x128xf32>
    %c0_9 = arith.constant 0 : index
    %c0_10 = arith.constant 0 : index
    %10 = vector.load %arg5[%c0_9, %c0_10] : memref<1x128xf32, #tpu.memory_space<vmem>>, vector<1x128xf32>
    %11 = vector.broadcast %10 : vector<1x128xf32> to vector<8x128xf32>
    %12 = arith.addf %9, %11 : vector<8x128xf32>
    %cst_11 = arith.constant dense<0xFF800000> : vector<8xf32>
    %13 = vector.multi_reduction <maximumf>, %12, %cst_11 [1] : vector<8x128xf32> to vector<8xf32>
    %14 = vector.shape_cast %13 : vector<8xf32> to vector<8x1xf32>
    %15 = vector.broadcast %14 : vector<8x1xf32> to vector<8x128xf32>
    %16 = arith.subf %12, %15 : vector<8x128xf32>
    %17 = math.exp %16 : vector<8x128xf32>
    %cst_12 = arith.constant dense<0.000000e+00> : vector<8xf32>
    %18 = vector.multi_reduction <add>, %17, %cst_12 [1] : vector<8x128xf32> to vector<8xf32>
    %19 = vector.shape_cast %18 : vector<8xf32> to vector<8x1xf32>
    %20 = tpu.reciprocal %19 {approx = true} : vector<8x1xf32> -> vector<8x1xf32>
    %21 = arith.mulf %19, %20 : vector<8x1xf32>
    %cst_13 = arith.constant 2.000000e+00 : f32
    %22 = vector.broadcast %cst_13 : f32 to vector<8x1xf32>
    %23 = arith.subf %22, %21 : vector<8x1xf32>
    %24 = arith.mulf %20, %23 : vector<8x1xf32>
    %25 = vector.broadcast %24 : vector<8x1xf32> to vector<8x128xf32>
    %26 = arith.mulf %17, %25 : vector<8x128xf32>
    %27 = vector.extract_strided_slice %26 {offsets = [0, 0], sizes = [8, 4], strides = [1, 1]} : vector<8x128xf32> to vector<8x4xf32>
    %c0_14 = arith.constant 0 : index
    %c0_15 = arith.constant 0 : index
    %28 = vector.load %arg6[%c0_14, %c0_15] : memref<8x4xf32, #tpu.memory_space<vmem>>, vector<8x4xf32>
    tpu.vector_store %arg6[%c0_14, %c0_15], %27 {strides = array<i32>} : memref<8x4xf32, #tpu.memory_space<vmem>>, vector<8x4xf32>,
    return
  }
  func.func @transform_0(%arg0: i32) -> (i32, i32) {
    %c0_i32 = arith.constant 0 : i32
    %c0_i32_0 = arith.constant 0 : i32
    return %arg0, %c0_i32 : i32, i32
  }
  func.func @transform_1(%arg0: i32) -> (i32, i32) {
    %c0_i32 = arith.constant 0 : i32
    %c0_i32_0 = arith.constant 0 : i32
    %c0_i32_1 = arith.constant 0 : i32
    return %c0_i32, %c0_i32_0 : i32, i32
  }
  func.func @transform_2(%arg0: i32) -> (i32, i32) {
    %c0_i32 = arith.constant 0 : i32
    %c0_i32_0 = arith.constant 0 : i32
    %c0_i32_1 = arith.constant 0 : i32
    return %c0_i32, %c0_i32_0 : i32, i32
  }
  func.func @transform_3(%arg0: i32) -> (i32, i32) {
    %c0_i32 = arith.constant 0 : i32
    %c0_i32_0 = arith.constant 0 : i32
    %c0_i32_1 = arith.constant 0 : i32
    return %c0_i32, %c0_i32_0 : i32, i32
  }
  func.func @transform_4(%arg0: i32) -> (i32, i32) {
    %c0_i32 = arith.constant 0 : i32
    %c0_i32_0 = arith.constant 0 : i32
    %c0_i32_1 = arith.constant 0 : i32
    return %c0_i32, %c0_i32_0 : i32, i32
  }
  func.func @transform_5(%arg0: i32) -> (i32, i32) {
    %c0_i32 = arith.constant 0 : i32
    %c0_i32_0 = arith.constant 0 : i32
    return %arg0, %c0_i32 : i32, i32
  }
}

</mosaic_0001>

<bundles_post_ra>
// kernel: forward.1
= control target key start
LH: loop header
LB: loop body
LE: loop exit
PB: predicated region body
PF: predicated region fallthrough
CT: control target
= control target key end

     0   :  { %10 = vsyncpa [#allocation3], 0  ;;  %s481_s0 = inlined_call_operand.vmem [shape: f32[8,32], index: 0, kind: input, shape index: {}]   ;;  %s482_s1 = inlined_call_operand.hbm [shape: f32[32,128], index: 1, kind: input, shape index: {}]   ;;  %s483_s2 = inlined_call_operand.vmem [shape: f32[1,128], index: 2, kind: input, shape index: {}]   ;;  %s484_s3 = inlined_call_operand.hbm [shape: f32[128,128], index: 3, kind: input, shape index: {}]   ;;  %s485_s4 = inlined_call_operand.vmem [shape: f32[1,128], index: 4, kind: input, shape index: {}]   ;;  %s486_s5 = inlined_call_operand.vmem [shape: f32[8,4], index: 5, kind: output, shape index: {}]  }
   0x1   :  { %11 = vsyncpa [#allocation5], 0  ;;  %s408_s18 = smov [#allocation2]   ;;  %s360_s22 = scalar_lea.hbm %s482_s1, 512 }
   0x2   :  { %s19_s19 = sshll.u32 %s408_s18, 4  ;;  %p361_p0 = scmp.ne.s32.totalorder %s482_s1, %s360_s22  ;;  %s20_s19 = int_to_ptr.vmem [resolvable:$true] %s19_s19 }
   0x3   :  { %p364_p1 = scmp.lt.u32.totalorder %s360_s22, %s482_s1 }
   0x5   :  { %p366_p2 = pnand %p364_p1, %p361_p0 }
   0x7   :  { %369 = shalt.err (!%p366_p2)
}
   0x8   :  { %s370_s27 = scalar_lea.vmem %s20_s19, 512  ;;  %p375_p4 = scmp.lt.s32.totalorder %s20_s19, %s20_s19 }
   0x9   :  { %p371_p3 = scmp.ne.s32.totalorder %s20_s19, %s370_s27  ;;  %p376_p5 = scmp.lt.s32.totalorder %s370_s27, %s370_s27 }
   0xb   :  { %p377_p6 = por %p376_p5, %p375_p4 }
   0xd   :  { %p378_p7 = pnand %p377_p6, %p371_p3 }
   0xf   :  { %381 = shalt.err (!%p378_p7)
}
  0x10   :  { %s409_s28 = smov 128   ;;  %s410_s29 = smov 8  }
  0x11   :  { %25 = dma.hbm_to_vmem [thread:$0]  %s482_s1, 512, %s20_s19, [#allocation3], %s409_s28, %s409_s28, %s410_s29  }
  0x12   :  { %s411_s7 = smov [#allocation4]   ;;  %s382_s11 = scalar_lea.hbm %s484_s3, 2048 }
  0x13   :  { %s33_s8 = sshll.u32 %s411_s7, 4  ;;  %p383_p8 = scmp.ne.s32.totalorder %s484_s3, %s382_s11  ;;  %s34_s8 = int_to_ptr.vmem [resolvable:$true] %s33_s8 }
  0x14   :  { %p386_p9 = scmp.lt.u32.totalorder %s382_s11, %s484_s3 }
  0x16   :  { %p388_p10 = pnand %p386_p9, %p383_p8 }
  0x18   :  { %391 = shalt.err (!%p388_p10)
}
  0x19   :  { %s392_s16 = scalar_lea.vmem %s34_s8, 2048  ;;  %p397_p12 = scmp.lt.s32.totalorder %s34_s8, %s34_s8 }
  0x1a   :  { %p393_p11 = scmp.ne.s32.totalorder %s34_s8, %s392_s16  ;;  %p398_p13 = scmp.lt.s32.totalorder %s392_s16, %s392_s16 }
  0x1c   :  { %p399_p0 = por %p398_p13, %p397_p12 }
  0x1e   :  { %p400_p1 = pnand %p399_p0, %p393_p11 }
  0x20   :  { %403 = shalt.err (!%p400_p1)
}
  0x21   :  { %39 = dma.hbm_to_vmem [thread:$0]  %s484_s3, 2048, %s34_s8, [#allocation5], %s409_s28, %s409_s28, %s410_s29  }
  0x22   :  { %404 = dma.done.wait [#allocation3], 512  }
  0x23   :  { %405 = vsyncadd [#allocation3], 4294966784 }
  0x24   :  { %406 = dma.done.wait [#allocation5], 2048  }
  0x25   :  { %407 = vsyncadd [#allocation5], 4294965248  ;;  %v412_v0 = vmov 0.0|0.0   ;;  %vm413_vm0 = vmmov 0   ;;  %v414_v1 = vmov 0.0   ;;  %v49_v2 = vld [vmem:[#allocation2] sm:$0xff] }
  0x26   :  { %319 = vmatprep.subr.bf16.mxu0 %v412_v0  ;;  %281 = vmatprep.mubr.msk.f32.mxu0 %vm413_vm0, %v414_v1  ;;  %v50_v3 = vld [vmem:[#allocation2 + $0x8] sm:$0xff]  ;;  %v51_v4 = vld [vmem:[#allocation2 + $0x10] sm:$0xff]  ;;  %v52_v6 = vld [vmem:[#allocation2 + $0x18] sm:$0xff]  ;;  %vm60_vm1 = vcmask 261120   ;;  %vm240_vm2 = vcmask 31744  }
  0x27   :  { %325 = vmatprep.subr.bf16.mxu1 %v412_v0  ;;  %316 = vmatprep.mubr.msk.f32.mxu1 %vm413_vm0, %v414_v1  ;;  %v320_v5 = vpack.c.bf16 %v50_v3, %v49_v2  ;;  %v135_v7 = vld [vmem:[#allocation4] sm:$0xff]  ;;  %v136_v8 = vld [vmem:[#allocation4 + $0x8] sm:$0xff]  ;;  %v137_v9 = vld [vmem:[#allocation4 + $0x10] sm:$0xff]  ;;  %v323_v11 = vpack.c.bf16 %v52_v6, %v51_v4 }
  0x28   :  { %v138_v10 = vld [vmem:[#allocation4 + $0x18] sm:$0xff]  ;;  %v326_v12 = vpack.c.bf16 %v136_v8, %v135_v7  ;;  %v139_v14 = vld [vmem:[#allocation4 + $0x20] sm:$0xff]  ;;  %v140_v15 = vld [vmem:[#allocation4 + $0x28] sm:$0xff] }
  0x29   :  { %321 = vmatpush3.bf16.msra.mxu0 %v320_v5  ;;  %v329_v13 = vpack.c.bf16 %v138_v10, %v137_v9  ;;  %v48_v16 = vld [vmem:[%s481_s0] sm:$0xff]  ;;  %v332_v17 = vpack.c.bf16 %v140_v15, %v139_v14  ;;  %v141_v18 = vld [vmem:[#allocation4 + $0x30] sm:$0xff]  ;;  %v142_v19 = vld [vmem:[#allocation4 + $0x38] sm:$0xff] }
  0x2a   :  { %322 = vmatprep.subr.bf16.mxu0 %v412_v0  ;;  %327 = vmatpush3.bf16.msra.mxu1 %v326_v12  ;;  %v335_v20 = vpack.c.bf16 %v142_v19, %v141_v18  ;;  %v143_v21 = vld [vmem:[#allocation4 + $0x40] sm:$0xff]  ;;  %v144_v22 = vld [vmem:[#allocation4 + $0x48] sm:$0xff]  ;;  %v145_v24 = vld [vmem:[#allocation4 + $0x50] sm:$0xff] }
  0x2b   :  { %328 = vmatprep.subr.bf16.mxu1 %v412_v0  ;;  %v338_v23 = vpack.c.bf16 %v144_v22, %v143_v21  ;;  %v146_v25 = vld [vmem:[#allocation4 + $0x58] sm:$0xff]  ;;  %v147_v27 = vld [vmem:[#allocation4 + $0x60] sm:$0xff]  ;;  %v148_v28 = vld [vmem:[#allocation4 + $0x68] sm:$0xff] }
  0x2c   :  { %v341_v26 = vpack.c.bf16 %v146_v25, %v145_v24  ;;  %v344_v29 = vpack.c.bf16 %v148_v28, %v147_v27  ;;  %v149_v30 = vld [vmem:[#allocation4 + $0x70] sm:$0xff]  ;;  %v150_v31 = vld [vmem:[#allocation4 + $0x78] sm:$0xff]  ;;  %v248_v33 = vld [vmem:[%s483_s2] ss:$0 sm:$0xff] }
  0x2d   :  { %324 = vmatpush3.bf16.msra.mxu0 %v323_v11  ;;  %v347_v32 = vpack.c.bf16 %v150_v31, %v149_v30  ;;  %v250_v38 = vld [vmem:[%s485_s4] ss:$0 sm:$0xff] }
  0x2e   :  { %330 = vmatpush3.bf16.msra.mxu1 %v329_v13 }
  0x2f   :  { %331 = vmatprep.subr.bf16.mxu1 %v412_v0 }
  0x30   :  { %282 = vmatmul.mubr.msk.f32.vlgmr.msra.gmra.mrb[0].mxu0 %vm60_vm1, %v48_v16 }
  0x32   :  { %333 = vmatpush3.bf16.msra.mxu1 %v332_v17 }
  0x33   :  { %334 = vmatprep.subr.bf16.mxu1 %v412_v0 }
  0x36   :  { %336 = vmatpush3.bf16.msra.mxu1 %v335_v20 }
  0x37   :  { %337 = vmatprep.subr.bf16.mxu1 %v412_v0 }
  0x3a   :  { %339 = vmatpush3.bf16.msra.mxu1 %v338_v23 }
  0x3b   :  { %340 = vmatprep.subr.bf16.mxu1 %v412_v0 }
  0x3e   :  { %342 = vmatpush3.bf16.msra.mxu1 %v341_v26 }
  0x3f   :  { %343 = vmatprep.subr.bf16.mxu1 %v412_v0 }
  0x42   :  { %345 = vmatpush3.bf16.msra.mxu1 %v344_v29 }
  0x43   :  { %346 = vmatprep.subr.bf16.mxu1 %v412_v0 }
  0x46   :  { %348 = vmatpush3.bf16.msra.mxu1 %v347_v32 }
 0x103   :  { %v130_v34 = vpop.f32.mrb[0].mxu0 }
 0x104   :  { %v131_v35 = vadd.f32 %v248_v33, %v130_v34  ;;  %v283_v36 = vpop.f32.mrb[1].mxu0 }
 0x106   :  { %v134_v37 = vmax.f32 %v131_v35, 0.0 }
 0x108   :  { %317 = vmatmul.mubr.f32.vlgmr.msra.gmra.mrb[0].mxu1 %v134_v37 }
 0x1db   :  { %v224_v39 = vpop.f32.mrb[0].mxu1 }
 0x1dc   :  { %v225_v40 = vadd.f32 %v250_v38, %v224_v39  ;;  %v318_v41 = vpop.f32.mrb[1].mxu1 }
 0x1de   :  { %228 = vmax.xlane.f32.xlu0 %v225_v40 }
 0x26b   :  { %v229_v42 = vpop.xlane.xlu0 %228 }
 0x26c   :  { %v230_v43 = vsub.f32 %v225_v40, %v229_v42 }
 0x26e   :  { %v231_v44 = vmul.f32 1.442695, %v230_v43 }
 0x270   :  { %356 = vpow2.f32 %v231_v44 }
 0x27a   :  { %v357_v45 = vpop.eup %356 }
 0x27b   :  { %233 = vadd.xlane.f32.xlu0 %v357_v45 }
 0x308   :  { %v234_v46 = vpop.xlane.xlu0 %233 }
 0x309   :  { %358 = vrcp.f32 %v234_v46 }
 0x313   :  { %v359_v47 = vpop.eup %358 }
 0x314   :  { %v236_v48 = vmul.f32 %v359_v47, %v234_v46 }
 0x316   :  { %v237_v49 = vsub.f32 2.0, %v236_v48 }
 0x318   :  { %v238_v50 = vmul.f32 %v359_v47, %v237_v49 }
 0x31a   :  { %v239_v51 = vmul.f32 %v357_v45, %v238_v50 }
 0x31c   :  { %241 = vst.msk [vmem:[%s486_s5] sm:$0xff] %vm240_vm2, %v239_v51 }
 0x31d   :  { %246 = vsyncpa [#allocation3], 1 }
 0x31e   :  { %247 = vsyncpa [#allocation5], 1 }

</bundles_post_ra>
